<compile_context>
chip_gen: v7x
topology: tpu7x:2x2x1
jax: 0.10.0
libtpu: 0.0.40
codegen_flags: <defaults>
</compile_context>

<pallas_src>
import numpy as np
import jax
import jax.numpy as jnp
from jax.experimental import pallas as pl
from jax.experimental.pallas import tpu as pltpu


F_PAD = 128   # lane-dense padded feature width (covers in=16, hid=32, out=16)


# ----------------------------- fused Pallas kernel ----------------------------

def _fused_rgcn_predictor_kernel(
        a_ra, a_rb, xu, xi,
        w1_ra, b1_ra, w1_rb, b1_rb,
        w2_ra, b2_ra, w2_rb, b2_rb,
        su, sv, o_ref):
    """Full forward for the user<->item heterograph, fused in one kernel.

    a_ra : (n_item, n_user)  normalized adjacency, relation 'rates'    (user -> item)
    a_rb : (n_user, n_item)  normalized adjacency, relation 'rated_by' (item -> user)
    xu   : (n_user, F_PAD)   zero-padded user features
    xi   : (n_item, F_PAD)   zero-padded item features
    w*/b*: (F_PAD, F_PAD) / (1, F_PAD)  zero-padded GraphConv weights / biases
    su   : (E_pad, n_user)   one-hot src-user selector for all (pos ++ neg) edges
    sv   : (E_pad, n_item)   one-hot dst-item selector for all (pos ++ neg) edges
    o_ref: (E_pad, F_PAD)    edge score broadcast across lanes (lane-dense store)
    """
    f32 = jnp.float32

    # ---- layer 1: HeteroGraphConv(sum of per-relation GraphConv) + bias + ReLU ----
    h1_item = jnp.dot(a_ra[...],
                      jnp.dot(xu[...], w1_ra[...], preferred_element_type=f32),
                      preferred_element_type=f32) + b1_ra[...]
    h1_user = jnp.dot(a_rb[...],
                      jnp.dot(xi[...], w1_rb[...], preferred_element_type=f32),
                      preferred_element_type=f32) + b1_rb[...]
    h1_item = jnp.maximum(h1_item, 0.0)
    h1_user = jnp.maximum(h1_user, 0.0)

    # ---- layer 2: HeteroGraphConv(sum) + bias ----
    h2_item = jnp.dot(a_ra[...],
                      jnp.dot(h1_user, w2_ra[...], preferred_element_type=f32),
                      preferred_element_type=f32) + b2_ra[...]
    h2_user = jnp.dot(a_rb[...],
                      jnp.dot(h1_item, w2_rb[...], preferred_element_type=f32),
                      preferred_element_type=f32) + b2_rb[...]

    # ---- HeteroDotProductPredictor on etype='rates': score[e] = <h_u[u_e], h_i[v_e]> ----
    hu = jnp.dot(su[...], h2_user, preferred_element_type=f32)   # (E_pad, F_PAD)
    hv = jnp.dot(sv[...], h2_item, preferred_element_type=f32)   # (E_pad, F_PAD)
    score = jnp.sum(hu * hv, axis=-1, keepdims=True)             # (E_pad, 1)
    o_ref[...] = jnp.broadcast_to(score, o_ref.shape)            # unmasked lane-dense store


def _full_spec(shape):
    return pl.BlockSpec(shape, lambda i: (0, 0))


def fused_forward(a_rates, a_rated_by, xu_p, xi_p, params_p, s_u, s_v):
    """One pallas_call for the whole Model.forward (both relations, both layers,
    both predictors). Returns (E_pad, F_PAD) scores, score replicated over lanes."""
    e_pad = s_u.shape[0]
    args = (a_rates, a_rated_by, xu_p, xi_p,
            params_p["w1"]["rates"], params_p["b1"]["rates"],
            params_p["w1"]["rated_by"], params_p["b1"]["rated_by"],
            params_p["w2"]["rates"], params_p["b2"]["rates"],
            params_p["w2"]["rated_by"], params_p["b2"]["rated_by"],
            s_u, s_v)
    return pl.pallas_call(
        _fused_rgcn_predictor_kernel,
        out_shape=jax.ShapeDtypeStruct((e_pad, F_PAD), jnp.float32),
        grid=(1,),
        in_specs=[_full_spec(tuple(a.shape)) for a in args],
        out_specs=_full_spec((e_pad, F_PAD)),
        compiler_params=pltpu.CompilerParams(
            dimension_semantics=("arbitrary",)),
    )(*args)


# ------------------------------- host-side glue --------------------------------

def normalized_adjacency(src, dst, n_src, n_dst):
    """Dense D_dst^{-1/2} A D_src^{-1/2}, degrees clamped >= 1 (DGL GraphConv norm='both')."""
    a = np.zeros((n_dst, n_src), dtype=np.float32)
    np.add.at(a, (dst, src), 1.0)
    out_deg = np.clip(a.sum(axis=0), 1.0, None)   # per-src out-degree
    in_deg = np.clip(a.sum(axis=1), 1.0, None)    # per-dst in-degree
    a_norm = (in_deg[:, None] ** -0.5) * a * (out_deg[None, :] ** -0.5)
    return jnp.asarray(a_norm)


def pad_to(arr, rows, cols):
    a = np.asarray(arr, dtype=np.float32).reshape(-1, arr.shape[-1]) if np.ndim(arr) > 1 \
        else np.asarray(arr, dtype=np.float32).reshape(1, -1)
    out = np.zeros((rows, cols), dtype=np.float32)
    out[: a.shape[0], : a.shape[1]] = a
    return jnp.asarray(out)


# ---------------------------------- main ---------------------------------------

if __name__ == "__main__":
    # Small synthetic heterograph: users rate items, plus the reverse relation.
    # TODO(synk): original script loads ratings from disk and builds a DGL graph;
    # here the graph is synthesized deterministically in-script.
    n_user, n_item = 8, 8
    in_features, hidden_features, out_features = 16, 32, 16
    n_edges, n_neg_edges = 12, 12
    E_TOT = n_edges + n_neg_edges
    E_PAD = 32                                    # pad edge rows to a sublane multiple

    key = jax.random.PRNGKey(0)
    keys = jax.random.split(key, 16)

    # positive edges (user -> item) and negative-sample edges
    src_u = np.asarray(jax.random.randint(keys[0], (n_edges,), 0, n_user))
    dst_i = np.asarray(jax.random.randint(keys[1], (n_edges,), 0, n_item))
    neg_src_u = np.asarray(jax.random.randint(keys[2], (n_neg_edges,), 0, n_user))
    neg_dst_i = np.asarray(jax.random.randint(keys[3], (n_neg_edges,), 0, n_item))

    adjs = {
        "rates":    normalized_adjacency(src_u, dst_i, n_user, n_item),   # (n_item, n_user)
        "rated_by": normalized_adjacency(dst_i, src_u, n_item, n_user),   # (n_user, n_item)
    }

    # deterministic parameter init (one GraphConv weight+bias per relation, per layer)
    def init_w(k, fan_in, fan_out):
        return (jax.random.normal(k, (fan_in, fan_out), jnp.float32)
                / np.sqrt(fan_in)).astype(jnp.float32)

    params = {
        "w1": {"rates":    init_w(keys[4], in_features, hidden_features),
               "rated_by": init_w(keys[5], in_features, hidden_features)},
        "b1": {"rates":    jnp.zeros((hidden_features,), jnp.float32),
               "rated_by": jnp.zeros((hidden_features,), jnp.float32)},
        "w2": {"rates":    init_w(keys[6], hidden_features, out_features),
               "rated_by": init_w(keys[7], hidden_features, out_features)},
        "b2": {"rates":    jnp.zeros((out_features,), jnp.float32),
               "rated_by": jnp.zeros((out_features,), jnp.float32)},
    }

    # input node features per node type
    x = {
        "user": jax.random.normal(keys[8], (n_user, in_features), jnp.float32),
        "item": jax.random.normal(keys[9], (n_item, in_features), jnp.float32),
    }

    # ---- lane-dense padding (zero padding preserves the math exactly) ----
    xu_p = pad_to(np.asarray(x["user"]), n_user, F_PAD)
    xi_p = pad_to(np.asarray(x["item"]), n_item, F_PAD)
    params_p = {
        "w1": {r: pad_to(np.asarray(params["w1"][r]), F_PAD, F_PAD) for r in params["w1"]},
        "b1": {r: pad_to(np.asarray(params["b1"][r]), 1, F_PAD) for r in params["b1"]},
        "w2": {r: pad_to(np.asarray(params["w2"][r]), F_PAD, F_PAD) for r in params["w2"]},
        "b2": {r: pad_to(np.asarray(params["b2"][r]), 1, F_PAD) for r in params["b2"]},
    }

    # one-hot edge selectors (pos edges first, then neg edges), zero-padded rows
    all_u = np.concatenate([src_u, neg_src_u])
    all_v = np.concatenate([dst_i, neg_dst_i])
    s_u = np.zeros((E_PAD, n_user), np.float32)
    s_v = np.zeros((E_PAD, n_item), np.float32)
    s_u[np.arange(E_TOT), all_u] = 1.0
    s_v[np.arange(E_TOT), all_v] = 1.0
    s_u, s_v = jnp.asarray(s_u), jnp.asarray(s_v)

    # ---- single fused kernel invocation for the entire forward pass ----
    scores = fused_forward(adjs["rates"], adjs["rated_by"], xu_p, xi_p,
                           params_p, s_u, s_v)
    jax.block_until_ready(scores)

    pos_score = scores[:n_edges, 0:1]
    neg_score = scores[n_edges:E_TOT, 0:1]

    # ---- silent sanity check vs pure-jnp (unpadded) reference ----
    def ref_conv(a, xx, w, b):
        return a @ (xx @ w) + b[None, :]

    h1u = ref_conv(adjs["rated_by"], x["item"], params["w1"]["rated_by"], params["b1"]["rated_by"])
    h1i = ref_conv(adjs["rates"], x["user"], params["w1"]["rates"], params["b1"]["rates"])
    h1u, h1i = jnp.maximum(h1u, 0.0), jnp.maximum(h1i, 0.0)
    h2u = ref_conv(adjs["rated_by"], h1i, params["w2"]["rated_by"], params["b2"]["rated_by"])
    h2i = ref_conv(adjs["rates"], h1u, params["w2"]["rates"], params["b2"]["rates"])
    ref_pos = jnp.sum(h2u[src_u] * h2i[dst_i], axis=-1, keepdims=True)
    ref_neg = jnp.sum(h2u[neg_src_u] * h2i[neg_dst_i], axis=-1, keepdims=True)
    assert jnp.allclose(pos_score, ref_pos, atol=1e-4), "positive-score mismatch"
    assert jnp.allclose(neg_score, ref_neg, atol=1e-4), "negative-score mismatch"
    assert pos_score.shape == (n_edges, 1) and neg_score.shape == (n_neg_edges, 1)

    print("KERNEL_OK")
</pallas_src>

<mosaic_0001>
module attributes {stable_mosaic.version = 11 : i64} {
  func.func @_fused_rgcn_predictor_kernel(%arg0: i32, %arg1: memref<8x8xf32, #tpu.memory_space<vmem>>, %arg2: memref<8x8xf32, #tpu.memory_space<vmem>>, %arg3: memref<8x128xf32, #tpu.memory_space<vmem>>, %arg4: memref<8x128xf32, #tpu.memory_space<vmem>>, %arg5: memref<128x128xf32, #tpu.memory_space<vmem>>, %arg6: memref<1x128xf32, #tpu.memory_space<vmem>>, %arg7: memref<128x128xf32, #tpu.memory_space<vmem>>, %arg8: memref<1x128xf32, #tpu.memory_space<vmem>>, %arg9: memref<128x128xf32, #tpu.memory_space<vmem>>, %arg10: memref<1x128xf32, #tpu.memory_space<vmem>>, %arg11: memref<128x128xf32, #tpu.memory_space<vmem>>, %arg12: memref<1x128xf32, #tpu.memory_space<vmem>>, %arg13: memref<32x8xf32, #tpu.memory_space<vmem>>, %arg14: memref<32x8xf32, #tpu.memory_space<vmem>>, %arg15: memref<32x128xf32, #tpu.memory_space<vmem>>) attributes {dimension_semantics = [#tpu.dimension_semantics<arbitrary>], iteration_bounds = array<i64: 1>, scalar_prefetch = 0 : i64, scratch_operands = 0 : i64, tpu.core_type = #tpu.core_type<tc>, window_params = [{pipeline_mode = #tpu.pipeline_mode<synchronous>, transform_indices = @transform_0, window_bounds = array<i64: 8, 8>}, {pipeline_mode = #tpu.pipeline_mode<synchronous>, transform_indices = @transform_1, window_bounds = array<i64: 8, 8>}, {pipeline_mode = #tpu.pipeline_mode<synchronous>, transform_indices = @transform_2, window_bounds = array<i64: 8, 128>}, {pipeline_mode = #tpu.pipeline_mode<synchronous>, transform_indices = @transform_3, window_bounds = array<i64: 8, 128>}, {pipeline_mode = #tpu.pipeline_mode<synchronous>, transform_indices = @transform_4, window_bounds = array<i64: 128, 128>}, {pipeline_mode = #tpu.pipeline_mode<synchronous>, transform_indices = @transform_5, window_bounds = array<i64: 1, 128>}, {pipeline_mode = #tpu.pipeline_mode<synchronous>, transform_indices = @transform_6, window_bounds = array<i64: 128, 128>}, {pipeline_mode = #tpu.pipeline_mode<synchronous>, transform_indices = @transform_7, window_bounds = array<i64: 1, 128>}, {pipeline_mode = #tpu.pipeline_mode<synchronous>, transform_indices = @transform_8, window_bounds = array<i64: 128, 128>}, {pipeline_mode = #tpu.pipeline_mode<synchronous>, transform_indices = @transform_9, window_bounds = array<i64: 1, 128>}, {pipeline_mode = #tpu.pipeline_mode<synchronous>, transform_indices = @transform_10, window_bounds = array<i64: 128, 128>}, {pipeline_mode = #tpu.pipeline_mode<synchronous>, transform_indices = @transform_11, window_bounds = array<i64: 1, 128>}, {pipeline_mode = #tpu.pipeline_mode<synchronous>, transform_indices = @transform_12, window_bounds = array<i64: 32, 8>}, {pipeline_mode = #tpu.pipeline_mode<synchronous>, transform_indices = @transform_13, window_bounds = array<i64: 32, 8>}, {pipeline_mode = #tpu.pipeline_mode<synchronous>, transform_indices = @transform_14, window_bounds = array<i64: 32, 128>}]} {
    %c0 = arith.constant 0 : index
    %c0_0 = arith.constant 0 : index
    %0 = vector.load %arg1[%c0, %c0_0] : memref<8x8xf32, #tpu.memory_space<vmem>>, vector<8x8xf32>
    %c0_1 = arith.constant 0 : index
    %c0_2 = arith.constant 0 : index
    %1 = vector.load %arg3[%c0_1, %c0_2] : memref<8x128xf32, #tpu.memory_space<vmem>>, vector<8x128xf32>
    %c0_3 = arith.constant 0 : index
    %c0_4 = arith.constant 0 : index
    %2 = vector.load %arg5[%c0_3, %c0_4] : memref<128x128xf32, #tpu.memory_space<vmem>>, vector<128x128xf32>
    %cst = arith.constant dense<0.000000e+00> : vector<8x128xf32>
    %3 = tpu.matmul %1, %2, %cst {dimension_numbers = #tpu.dot_dimension_numbers<[1], [0], [0], [1], [0, 0, 1, 1], [], []>} : vector<8x128xf32>, vector<128x128xf32>, vector<8x128xf32> -> vector<8x128xf32>
    %cst_5 = arith.constant dense<0.000000e+00> : vector<8x128xf32>
    %4 = tpu.matmul %0, %3, %cst_5 {dimension_numbers = #tpu.dot_dimension_numbers<[1], [0], [0], [1], [0, 0, 1, 1], [], []>} : vector<8x8xf32>, vector<8x128xf32>, vector<8x128xf32> -> vector<8x128xf32>
    %c0_6 = arith.constant 0 : index
    %c0_7 = arith.constant 0 : index
    %5 = vector.load %arg6[%c0_6, %c0_7] : memref<1x128xf32, #tpu.memory_space<vmem>>, vector<1x128xf32>
    %6 = vector.broadcast %5 : vector<1x128xf32> to vector<8x128xf32>
    %7 = arith.addf %4, %6 : vector<8x128xf32>
    %c0_8 = arith.constant 0 : index
    %c0_9 = arith.constant 0 : index
    %8 = vector.load %arg2[%c0_8, %c0_9] : memref<8x8xf32, #tpu.memory_space<vmem>>, vector<8x8xf32>
    %c0_10 = arith.constant 0 : index
    %c0_11 = arith.constant 0 : index
    %9 = vector.load %arg4[%c0_10, %c0_11] : memref<8x128xf32, #tpu.memory_space<vmem>>, vector<8x128xf32>
    %c0_12 = arith.constant 0 : index
    %c0_13 = arith.constant 0 : index
    %10 = vector.load %arg7[%c0_12, %c0_13] : memref<128x128xf32, #tpu.memory_space<vmem>>, vector<128x128xf32>
    %cst_14 = arith.constant dense<0.000000e+00> : vector<8x128xf32>
    %11 = tpu.matmul %9, %10, %cst_14 {dimension_numbers = #tpu.dot_dimension_numbers<[1], [0], [0], [1], [0, 0, 1, 1], [], []>} : vector<8x128xf32>, vector<128x128xf32>, vector<8x128xf32> -> vector<8x128xf32>
    %cst_15 = arith.constant dense<0.000000e+00> : vector<8x128xf32>
    %12 = tpu.matmul %8, %11, %cst_15 {dimension_numbers = #tpu.dot_dimension_numbers<[1], [0], [0], [1], [0, 0, 1, 1], [], []>} : vector<8x8xf32>, vector<8x128xf32>, vector<8x128xf32> -> vector<8x128xf32>
    %c0_16 = arith.constant 0 : index
    %c0_17 = arith.constant 0 : index
    %13 = vector.load %arg8[%c0_16, %c0_17] : memref<1x128xf32, #tpu.memory_space<vmem>>, vector<1x128xf32>
    %14 = vector.broadcast %13 : vector<1x128xf32> to vector<8x128xf32>
    %15 = arith.addf %12, %14 : vector<8x128xf32>
    %cst_18 = arith.constant 0.000000e+00 : f32
    %16 = vector.broadcast %cst_18 : f32 to vector<8x128xf32>
    %17 = arith.maximumf %7, %16 : vector<8x128xf32>
    %cst_19 = arith.constant 0.000000e+00 : f32
    %18 = vector.broadcast %cst_19 : f32 to vector<8x128xf32>
    %19 = arith.maximumf %15, %18 : vector<8x128xf32>
    %c0_20 = arith.constant 0 : index
    %c0_21 = arith.constant 0 : index
    %20 = vector.load %arg1[%c0_20, %c0_21] : memref<8x8xf32, #tpu.memory_space<vmem>>, vector<8x8xf32>
    %c0_22 = arith.constant 0 : index
    %c0_23 = arith.constant 0 : index
    %21 = vector.load %arg9[%c0_22, %c0_23] : memref<128x128xf32, #tpu.memory_space<vmem>>, vector<128x128xf32>
    %cst_24 = arith.constant dense<0.000000e+00> : vector<8x128xf32>
    %22 = tpu.matmul %19, %21, %cst_24 {dimension_numbers = #tpu.dot_dimension_numbers<[1], [0], [0], [1], [0, 0, 1, 1], [], []>} : vector<8x128xf32>, vector<128x128xf32>, vector<8x128xf32> -> vector<8x128xf32>
    %cst_25 = arith.constant dense<0.000000e+00> : vector<8x128xf32>
    %23 = tpu.matmul %20, %22, %cst_25 {dimension_numbers = #tpu.dot_dimension_numbers<[1], [0], [0], [1], [0, 0, 1, 1], [], []>} : vector<8x8xf32>, vector<8x128xf32>, vector<8x128xf32> -> vector<8x128xf32>
    %c0_26 = arith.constant 0 : index
    %c0_27 = arith.constant 0 : index
    %24 = vector.load %arg10[%c0_26, %c0_27] : memref<1x128xf32, #tpu.memory_space<vmem>>, vector<1x128xf32>
    %25 = vector.broadcast %24 : vector<1x128xf32> to vector<8x128xf32>
    %26 = arith.addf %23, %25 : vector<8x128xf32>
    %c0_28 = arith.constant 0 : index
    %c0_29 = arith.constant 0 : index
    %27 = vector.load %arg2[%c0_28, %c0_29] : memref<8x8xf32, #tpu.memory_space<vmem>>, vector<8x8xf32>
    %c0_30 = arith.constant 0 : index
    %c0_31 = arith.constant 0 : index
    %28 = vector.load %arg11[%c0_30, %c0_31] : memref<128x128xf32, #tpu.memory_space<vmem>>, vector<128x128xf32>
    %cst_32 = arith.constant dense<0.000000e+00> : vector<8x128xf32>
    %29 = tpu.matmul %17, %28, %cst_32 {dimension_numbers = #tpu.dot_dimension_numbers<[1], [0], [0], [1], [0, 0, 1, 1], [], []>} : vector<8x128xf32>, vector<128x128xf32>, vector<8x128xf32> -> vector<8x128xf32>
    %cst_33 = arith.constant dense<0.000000e+00> : vector<8x128xf32>
    %30 = tpu.matmul %27, %29, %cst_33 {dimension_numbers = #tpu.dot_dimension_numbers<[1], [0], [0], [1], [0, 0, 1, 1], [], []>} : vector<8x8xf32>, vector<8x128xf32>, vector<8x128xf32> -> vector<8x128xf32>
    %c0_34 = arith.constant 0 : index
    %c0_35 = arith.constant 0 : index
    %31 = vector.load %arg12[%c0_34, %c0_35] : memref<1x128xf32, #tpu.memory_space<vmem>>, vector<1x128xf32>
    %32 = vector.broadcast %31 : vector<1x128xf32> to vector<8x128xf32>
    %33 = arith.addf %30, %32 : vector<8x128xf32>
    %c0_36 = arith.constant 0 : index
    %c0_37 = arith.constant 0 : index
    %34 = vector.load %arg13[%c0_36, %c0_37] : memref<32x8xf32, #tpu.memory_space<vmem>>, vector<32x8xf32>
    %cst_38 = arith.constant dense<0.000000e+00> : vector<32x128xf32>
    %35 = tpu.matmul %34, %33, %cst_38 {dimension_numbers = #tpu.dot_dimension_numbers<[1], [0], [0], [1], [0, 0, 1, 1], [], []>} : vector<32x8xf32>, vector<8x128xf32>, vector<32x128xf32> -> vector<32x128xf32>
    %c0_39 = arith.constant 0 : index
    %c0_40 = arith.constant 0 : index
    %36 = vector.load %arg14[%c0_39, %c0_40] : memref<32x8xf32, #tpu.memory_space<vmem>>, vector<32x8xf32>
    %cst_41 = arith.constant dense<0.000000e+00> : vector<32x128xf32>
    %37 = tpu.matmul %36, %26, %cst_41 {dimension_numbers = #tpu.dot_dimension_numbers<[1], [0], [0], [1], [0, 0, 1, 1], [], []>} : vector<32x8xf32>, vector<8x128xf32>, vector<32x128xf32> -> vector<32x128xf32>
    %38 = arith.mulf %35, %37 : vector<32x128xf32>
    %cst_42 = arith.constant dense<0.000000e+00> : vector<32xf32>
    %39 = vector.multi_reduction <add>, %38, %cst_42 [1] : vector<32x128xf32> to vector<32xf32>
    %40 = vector.shape_cast %39 : vector<32xf32> to vector<32x1xf32>
    %41 = vector.shape_cast %40 : vector<32x1xf32> to vector<32x1xf32>
    %42 = vector.broadcast %41 : vector<32x1xf32> to vector<32x128xf32>
    %c0_43 = arith.constant 0 : index
    %c0_44 = arith.constant 0 : index
    %43 = vector.load %arg15[%c0_43, %c0_44] : memref<32x128xf32, #tpu.memory_space<vmem>>, vector<32x128xf32>
    tpu.vector_store %arg15[%c0_43, %c0_44], %42 {strides = array<i32>} : memref<32x128xf32, #tpu.memory_space<vmem>>, vector<32x128xf32>,
    return
  }
  func.func @transform_0(%arg0: i32) -> (i32, i32) {
    %c0_i32 = arith.constant 0 : i32
    %c0_i32_0 = arith.constant 0 : i32
    %c0_i32_1 = arith.constant 0 : i32
    return %c0_i32, %c0_i32_0 : i32, i32
  }
  func.func @transform_1(%arg0: i32) -> (i32, i32) {
    %c0_i32 = arith.constant 0 : i32
    %c0_i32_0 = arith.constant 0 : i32
    %c0_i32_1 = arith.constant 0 : i32
    return %c0_i32, %c0_i32_0 : i32, i32
  }
  func.func @transform_2(%arg0: i32) -> (i32, i32) {
    %c0_i32 = arith.constant 0 : i32
    %c0_i32_0 = arith.constant 0 : i32
    %c0_i32_1 = arith.constant 0 : i32
    return %c0_i32, %c0_i32_0 : i32, i32
  }
  func.func @transform_3(%arg0: i32) -> (i32, i32) {
    %c0_i32 = arith.constant 0 : i32
    %c0_i32_0 = arith.constant 0 : i32
    %c0_i32_1 = arith.constant 0 : i32
    return %c0_i32, %c0_i32_0 : i32, i32
  }
  func.func @transform_4(%arg0: i32) -> (i32, i32) {
    %c0_i32 = arith.constant 0 : i32
    %c0_i32_0 = arith.constant 0 : i32
    %c0_i32_1 = arith.constant 0 : i32
    return %c0_i32, %c0_i32_0 : i32, i32
  }
  func.func @transform_5(%arg0: i32) -> (i32, i32) {
    %c0_i32 = arith.constant 0 : i32
    %c0_i32_0 = arith.constant 0 : i32
    %c0_i32_1 = arith.constant 0 : i32
    return %c0_i32, %c0_i32_0 : i32, i32
  }
  func.func @transform_6(%arg0: i32) -> (i32, i32) {
    %c0_i32 = arith.constant 0 : i32
    %c0_i32_0 = arith.constant 0 : i32
    %c0_i32_1 = arith.constant 0 : i32
    return %c0_i32, %c0_i32_0 : i32, i32
  }
  func.func @transform_7(%arg0: i32) -> (i32, i32) {
    %c0_i32 = arith.constant 0 : i32
    %c0_i32_0 = arith.constant 0 : i32
    %c0_i32_1 = arith.constant 0 : i32
    return %c0_i32, %c0_i32_0 : i32, i32
  }
  func.func @transform_8(%arg0: i32) -> (i32, i32) {
    %c0_i32 = arith.constant 0 : i32
    %c0_i32_0 = arith.constant 0 : i32
    %c0_i32_1 = arith.constant 0 : i32
    return %c0_i32, %c0_i32_0 : i32, i32
  }
  func.func @transform_9(%arg0: i32) -> (i32, i32) {
    %c0_i32 = arith.constant 0 : i32
    %c0_i32_0 = arith.constant 0 : i32
    %c0_i32_1 = arith.constant 0 : i32
    return %c0_i32, %c0_i32_0 : i32, i32
  }
  func.func @transform_10(%arg0: i32) -> (i32, i32) {
    %c0_i32 = arith.constant 0 : i32
    %c0_i32_0 = arith.constant 0 : i32
    %c0_i32_1 = arith.constant 0 : i32
    return %c0_i32, %c0_i32_0 : i32, i32
  }
  func.func @transform_11(%arg0: i32) -> (i32, i32) {
    %c0_i32 = arith.constant 0 : i32
    %c0_i32_0 = arith.constant 0 : i32
    %c0_i32_1 = arith.constant 0 : i32
    return %c0_i32, %c0_i32_0 : i32, i32
  }
  func.func @transform_12(%arg0: i32) -> (i32, i32) {
    %c0_i32 = arith.constant 0 : i32
    %c0_i32_0 = arith.constant 0 : i32
    %c0_i32_1 = arith.constant 0 : i32
    return %c0_i32, %c0_i32_0 : i32, i32
  }
  func.func @transform_13(%arg0: i32) -> (i32, i32) {
    %c0_i32 = arith.constant 0 : i32
    %c0_i32_0 = arith.constant 0 : i32
    %c0_i32_1 = arith.constant 0 : i32
    return %c0_i32, %c0_i32_0 : i32, i32
  }
  func.func @transform_14(%arg0: i32) -> (i32, i32) {
    %c0_i32 = arith.constant 0 : i32
    %c0_i32_0 = arith.constant 0 : i32
    %c0_i32_1 = arith.constant 0 : i32
    return %c0_i32, %c0_i32_0 : i32, i32
  }
}

</mosaic_0001>

<bundles_post_ra>
// kernel: tpu_custom_call.1
= control target key start
LH: loop header
LB: loop body
LE: loop exit
PB: predicated region body
PF: predicated region fallthrough
CT: control target
= control target key end

     0   :  { %19 = vsyncpa [#allocation3], 0  ;;  %s1804_s0 = inlined_call_operand.vmem [shape: f32[8,8], index: 0, kind: input, shape index: {}]   ;;  %s1805_s1 = inlined_call_operand.vmem [shape: f32[8,8], index: 1, kind: input, shape index: {}]   ;;  %s1806_s2 = inlined_call_operand.vmem [shape: f32[8,128], index: 2, kind: input, shape index: {}]   ;;  %s1807_s3 = inlined_call_operand.vmem [shape: f32[8,128], index: 3, kind: input, shape index: {}]   ;;  %s1808_s4 = inlined_call_operand.hbm [shape: f32[128,128], index: 4, kind: input, shape index: {}]   ;;  %s1809_s5 = inlined_call_operand.vmem [shape: f32[1,128], index: 5, kind: input, shape index: {}]   ;;  %s1810_s6 = inlined_call_operand.hbm [shape: f32[128,128], index: 6, kind: input, shape index: {}]   ;;  %s1811_s7 = inlined_call_operand.vmem [shape: f32[1,128], index: 7, kind: input, shape index: {}]   ;;  %s1812_s8 = inlined_call_operand.hbm [shape: f32[128,128], index: 8, kind: input, shape index: {}]   ;;  %s1813_s9 = inlined_call_operand.vmem [shape: f32[1,128], index: 9, kind: input, shape index: {}]   ;;  %s1814_s10 = inlined_call_operand.hbm [shape: f32[128,128], index: 10, kind: input, shape index: {}]   ;;  %s1815_s11 = inlined_call_operand.vmem [shape: f32[1,128], index: 11, kind: input, shape index: {}]   ;;  %s1816_s12 = inlined_call_operand.vmem [shape: f32[32,8], index: 12, kind: input, shape index: {}]   ;;  %s1817_s13 = inlined_call_operand.vmem [shape: f32[32,8], index: 13, kind: input, shape index: {}]   ;;  %s1818_s14 = inlined_call_operand.hbm [shape: f32[32,128], index: 14, kind: output, shape index: {}]  }
   0x1   :  { %20 = vsyncpa [#allocation6], 0 }
   0x2   :  { %21 = vsyncpa [#allocation9], 0 }
   0x3   :  { %22 = vsyncpa [#allocation4], 0  ;;  %s1507_s29 = smov [#allocation5]   ;;  %s1508_s15 = smov [#allocation2]  }
   0x4   :  { %s50_s30 = sshll.u32 %s1507_s29, 4  ;;  %s36_s16 = sshll.u32 %s1508_s15, 4  ;;  %s51_s30 = int_to_ptr.vmem [resolvable:$true] %s50_s30  ;;  %s1592_s16 = int_to_ptr.vmem [resolvable:$true] %s36_s16 }
   0x5   :  { %s1389_s19 = scalar_lea.hbm %s1810_s6, 2048 }
   0x6   :  { %p1390_p0 = scmp.ne.s32.totalorder %s1810_s6, %s1389_s19  ;;  %p1393_p1 = scmp.lt.u32.totalorder %s1389_s19, %s1810_s6 }
   0x8   :  { %p1395_p2 = pnand %p1393_p1, %p1390_p0 }
   0xa   :  { %1398 = shalt.err (!%p1395_p2)
}
   0xb   :  { %s1399_s24 = scalar_lea.vmem %s51_s30, 2048  ;;  %p1404_p4 = scmp.lt.s32.totalorder %s51_s30, %s51_s30 }
   0xc   :  { %p1400_p3 = scmp.ne.s32.totalorder %s51_s30, %s1399_s24  ;;  %p1405_p5 = scmp.lt.s32.totalorder %s1399_s24, %s1399_s24 }
   0xe   :  { %p1406_p6 = por %p1405_p5, %p1404_p4 }
  0x10   :  { %p1407_p7 = pnand %p1406_p6, %p1400_p3 }
  0x12   :  { %1410 = shalt.err (!%p1407_p7)
}
  0x13   :  { %s1509_s25 = smov 128   ;;  %s1510_s26 = smov 8  }
  0x14   :  { %56 = dma.hbm_to_vmem [thread:$0]  %s1810_s6, 2048, %s51_s30, [#allocation6], %s1509_s25, %s1509_s25, %s1510_s26  }
  0x15   :  { %s1411_s17 = scalar_lea.hbm %s1808_s4, 2048 }
  0x16   :  { %p1412_p8 = scmp.ne.s32.totalorder %s1808_s4, %s1411_s17  ;;  %p1415_p9 = scmp.lt.u32.totalorder %s1411_s17, %s1808_s4 }
  0x18   :  { %p1417_p10 = pnand %p1415_p9, %p1412_p8 }
  0x1a   :  { %1420 = shalt.err (!%p1417_p10)
}
  0x1b   :  { %s1421_s22 = scalar_lea.vmem %s1592_s16, 2048  ;;  %p1426_p12 = scmp.lt.s32.totalorder %s1592_s16, %s1592_s16 }
  0x1c   :  { %p1422_p11 = scmp.ne.s32.totalorder %s1592_s16, %s1421_s22  ;;  %p1427_p13 = scmp.lt.s32.totalorder %s1421_s22, %s1421_s22 }
  0x1e   :  { %p1428_p0 = por %p1427_p13, %p1426_p12 }
  0x20   :  { %p1429_p1 = pnand %p1428_p0, %p1422_p11 }
  0x22   :  { %1432 = shalt.err (!%p1429_p1)
}
  0x23   :  { %42 = dma.hbm_to_vmem [thread:$0]  %s1808_s4, 2048, %s1592_s16, [#allocation3], %s1509_s25, %s1509_s25, %s1510_s26  }
  0x24   :  { %s1511_s23 = smov [#allocation7]   ;;  %s1512_s27 = smov [#allocation8]  }
  0x25   :  { %s64_s24 = sshll.u32 %s1511_s23, 4  ;;  %s78_s28 = sshll.u32 %s1512_s27, 4  ;;  %s65_s24 = int_to_ptr.vmem [resolvable:$true] %s64_s24  ;;  %s1629_s28 = int_to_ptr.vmem [resolvable:$true] %s78_s28 }
  0x26   :  { %s1433_s17 = scalar_lea.hbm %s1812_s8, 2048 }
  0x27   :  { %p1434_p2 = scmp.ne.s32.totalorder %s1812_s8, %s1433_s17  ;;  %p1437_p3 = scmp.lt.u32.totalorder %s1433_s17, %s1812_s8 }
  0x29   :  { %p1439_p4 = pnand %p1437_p3, %p1434_p2 }
  0x2b   :  { %1442 = shalt.err (!%p1439_p4)
}
  0x2c   :  { %s1443_s4 = scalar_lea.vmem %s65_s24, 2048  ;;  %p1448_p6 = scmp.lt.s32.totalorder %s65_s24, %s65_s24 }
  0x2d   :  { %p1444_p5 = scmp.ne.s32.totalorder %s65_s24, %s1443_s4  ;;  %p1449_p7 = scmp.lt.s32.totalorder %s1443_s4, %s1443_s4 }
  0x2f   :  { %p1450_p8 = por %p1449_p7, %p1448_p6 }
  0x31   :  { %p1451_p9 = pnand %p1450_p8, %p1444_p5 }
  0x33   :  { %1454 = shalt.err (!%p1451_p9)
}
  0x34   :  { %70 = dma.hbm_to_vmem [thread:$0]  %s1812_s8, 2048, %s65_s24, [#allocation6], %s1509_s25, %s1509_s25, %s1510_s26  }
  0x35   :  { %s1455_s23 = scalar_lea.hbm %s1814_s10, 2048 }
  0x36   :  { %p1456_p10 = scmp.ne.s32.totalorder %s1814_s10, %s1455_s23  ;;  %p1459_p11 = scmp.lt.u32.totalorder %s1455_s23, %s1814_s10 }
  0x38   :  { %p1461_p12 = pnand %p1459_p11, %p1456_p10 }
  0x3a   :  { %1464 = shalt.err (!%p1461_p12)
}
  0x3b   :  { %s1465_s18 = scalar_lea.vmem %s1629_s28, 2048  ;;  %p1470_p0 = scmp.lt.s32.totalorder %s1629_s28, %s1629_s28 }
  0x3c   :  { %p1466_p13 = scmp.ne.s32.totalorder %s1629_s28, %s1465_s18  ;;  %p1471_p1 = scmp.lt.s32.totalorder %s1465_s18, %s1465_s18 }
  0x3e   :  { %p1472_p2 = por %p1471_p1, %p1470_p0 }
  0x40   :  { %p1473_p3 = pnand %p1472_p2, %p1466_p13 }
  0x42   :  { %1476 = shalt.err (!%p1473_p3)
}
  0x43   :  { %84 = dma.hbm_to_vmem [thread:$0]  %s1814_s10, 2048, %s1629_s28, [#allocation9], %s1509_s25, %s1509_s25, %s1510_s26  }
  0x44   :  { %1499 = dma.done.wait [#allocation3], 2048  }
  0x45   :  { %1500 = vsyncadd [#allocation3], 4294965248 }
  0x46   :  { %1501 = dma.done.wait [#allocation6], 4096  }
  0x47   :  { %1502 = vsyncadd [#allocation6], 4294963200 }
  0x48   :  { %1503 = dma.done.wait [#allocation9], 2048  }
  0x49   :  { %1504 = vsyncadd [#allocation9], 4294965248  ;;  %v1513_v0 = vmov 0.0|0.0   ;;  %vm1514_vm0 = vmmov 0   ;;  %v1515_v1 = vmov 0.0   ;;  %v105_v2 = vld [vmem:[#allocation2] sm:$0xff] }
  0x4a   :  { %1283 = vmatprep.subr.bf16.mxu0 %v1513_v0  ;;  %1139 = vmatprep.mubr.msk.f32.mxu0 %vm1514_vm0, %v1515_v1  ;;  %v106_v3 = vld [vmem:[#allocation2 + $0x8] sm:$0xff]  ;;  %v107_v4 = vld [vmem:[#allocation2 + $0x10] sm:$0xff]  ;;  %v108_v6 = vld [vmem:[#allocation2 + $0x18] sm:$0xff]  ;;  %vm198_vm1 = vcmask 64512  }
  0x4b   :  { %1142 = vmatprep.subr.mxu1 %v1515_v1  ;;  %1144 = vmatprep.mubr.msk.f32.mxu1 %vm1514_vm0, %v1515_v1  ;;  %v1284_v5 = vpack.c.bf16 %v106_v3, %v105_v2  ;;  %v1287_v7 = vpack.c.bf16 %v108_v6, %v107_v4  ;;  %v109_v8 = vld [vmem:[#allocation2 + $0x20] sm:$0xff]  ;;  %v110_v9 = vld [vmem:[#allocation2 + $0x28] sm:$0xff]  ;;  %v111_v11 = vld [vmem:[#allocation2 + $0x30] sm:$0xff] }
  0x4c   :  { %v1290_v10 = vpack.c.bf16 %v110_v9, %v109_v8  ;;  %v112_v12 = vld [vmem:[#allocation2 + $0x38] sm:$0xff]  ;;  %v113_v14 = vld [vmem:[#allocation2 + $0x40] sm:$0xff]  ;;  %v114_v15 = vld [vmem:[#allocation2 + $0x48] sm:$0xff] }
  0x4d   :  { %1285 = vmatpush3.bf16.msra.mxu0 %v1284_v5  ;;  %v1293_v13 = vpack.c.bf16 %v112_v12, %v111_v11  ;;  %v1296_v16 = vpack.c.bf16 %v114_v15, %v113_v14  ;;  %v115_v17 = vld [vmem:[#allocation2 + $0x50] sm:$0xff]  ;;  %v116_v18 = vld [vmem:[#allocation2 + $0x58] sm:$0xff]  ;;  %v117_v20 = vld [vmem:[#allocation2 + $0x60] sm:$0xff] }
  0x4e   :  { %1286 = vmatprep.subr.bf16.mxu0 %v1513_v0  ;;  %v1299_v19 = vpack.c.bf16 %v116_v18, %v115_v17  ;;  %v118_v21 = vld [vmem:[#allocation2 + $0x68] sm:$0xff]  ;;  %v119_v23 = vld [vmem:[#allocation2 + $0x70] sm:$0xff]  ;;  %v120_v24 = vld [vmem:[#allocation2 + $0x78] sm:$0xff] }
  0x4f   :  { %v1302_v22 = vpack.c.bf16 %v118_v21, %v117_v20  ;;  %v1305_v25 = vpack.c.bf16 %v120_v24, %v119_v23  ;;  %v104_v26 = vld [vmem:[%s1806_s2] sm:$0xff]  ;;  %v275_v28 = vld [vmem:[#allocation5 + $0x8] sm:$0xff]  ;;  %v276_v32 = vld [vmem:[#allocation5 + $0x10] sm:$0xff] }
  0x50   :  { %v274_v27 = vld [vmem:[#allocation5] sm:$0xff]  ;;  %v277_v33 = vld [vmem:[#allocation5 + $0x18] sm:$0xff]  ;;  %v279_v37 = vld [vmem:[#allocation5 + $0x28] sm:$0xff] }
  0x51   :  { %1288 = vmatpush3.bf16.msra.mxu0 %v1287_v7  ;;  %v1688_v29 = vld [vmem:[%s1804_s0] sm:$0xff]  ;;  %v1308_v30 = vpack.c.bf16 %v275_v28, %v274_v27  ;;  %v1311_v35 = vpack.c.bf16 %v277_v33, %v276_v32  ;;  %v280_v39 = vld [vmem:[#allocation5 + $0x30] sm:$0xff]  ;;  %v281_v40 = vld [vmem:[#allocation5 + $0x38] sm:$0xff] }
  0x52   :  { %1289 = vmatprep.subr.bf16.mxu0 %v1513_v0  ;;  %v278_v36 = vld [vmem:[#allocation5 + $0x20] sm:$0xff]  ;;  %v1317_v41 = vpack.c.bf16 %v281_v40, %v280_v39  ;;  %v283_v43 = vld [vmem:[#allocation5 + $0x48] sm:$0xff]  ;;  %v284_v45 = vld [vmem:[#allocation5 + $0x50] sm:$0xff] }
  0x53   :  { %v1314_v38 = vpack.c.bf16 %v279_v37, %v278_v36  ;;  %v282_v42 = vld [vmem:[#allocation5 + $0x40] sm:$0xff]  ;;  %v285_v46 = vld [vmem:[#allocation5 + $0x58] sm:$0xff]  ;;  %v287_v49 = vld [vmem:[#allocation5 + $0x68] sm:$0xff] }
  0x54   :  { %v1320_v44 = vpack.c.bf16 %v283_v43, %v282_v42  ;;  %v1323_v47 = vpack.c.bf16 %v285_v46, %v284_v45  ;;  %v286_v48 = vld [vmem:[#allocation5 + $0x60] sm:$0xff]  ;;  %v288_v51 = vld [vmem:[#allocation5 + $0x70] sm:$0xff]  ;;  %v289_v52 = vld [vmem:[#allocation5 + $0x78] sm:$0xff] }
  0x55   :  { %1291 = vmatpush3.bf16.msra.mxu0 %v1290_v10  ;;  %v1326_v50 = vpack.c.bf16 %v287_v49, %v286_v48  ;;  %v1329_v53 = vpack.c.bf16 %v289_v52, %v288_v51  ;;  %v273_v54 = vld [vmem:[%s1807_s3] sm:$0xff]  ;;  %v443_v56 = vld [vmem:[#allocation7 + $0x8] sm:$0xff]  ;;  %v444_v57 = vld [vmem:[#allocation7 + $0x10] sm:$0xff] }
  0x56   :  { %1292 = vmatprep.subr.bf16.mxu0 %v1513_v0  ;;  %v442_v55 = vld [vmem:[#allocation7] sm:$0xff]  ;;  %v445_v59 = vld [vmem:[#allocation7 + $0x18] sm:$0xff]  ;;  %v447_v62 = vld [vmem:[#allocation7 + $0x28] sm:$0xff] }
  0x57   :  { %v1332_v58 = vpack.c.bf16 %v443_v56, %v442_v55  ;;  %v1335_v60 = vpack.c.bf16 %v445_v59, %v444_v57  ;;  %v446_v61 = vld [vmem:[#allocation7 + $0x20] sm:$0xff]  ;;  %v448_v2 = vld [vmem:[#allocation7 + $0x30] sm:$0xff]  ;;  %v449_v3 = vld [vmem:[#allocation7 + $0x38] sm:$0xff] }
  0x58   :  { %v1338_v63 = vpack.c.bf16 %v447_v62, %v446_v61  ;;  %v1341_v4 = vpack.c.bf16 %v449_v3, %v448_v2  ;;  %v450_v5 = vld [vmem:[#allocation7 + $0x40] sm:$0xff]  ;;  %v451_v6 = vld [vmem:[#allocation7 + $0x48] sm:$0xff]  ;;  %v452_v8 = vld [vmem:[#allocation7 + $0x50] sm:$0xff] }
  0x59   :  { %1294 = vmatpush3.bf16.msra.mxu0 %v1293_v13  ;;  %v1344_v7 = vpack.c.bf16 %v451_v6, %v450_v5  ;;  %v453_v9 = vld [vmem:[#allocation7 + $0x58] sm:$0xff]  ;;  %v454_v11 = vld [vmem:[#allocation7 + $0x60] sm:$0xff]  ;;  %v455_v12 = vld [vmem:[#allocation7 + $0x68] sm:$0xff] }
  0x5a   :  { %1295 = vmatprep.subr.bf16.mxu0 %v1513_v0  ;;  %v1347_v10 = vpack.c.bf16 %v453_v9, %v452_v8  ;;  %v1350_v13 = vpack.c.bf16 %v455_v12, %v454_v11  ;;  %v457_v20 = vld [vmem:[#allocation7 + $0x78] sm:$0xff]  ;;  %v605_v27 = vld [vmem:[#allocation8] sm:$0xff]  ;;  %v606_v28 = vld [vmem:[#allocation8 + $0x8] sm:$0xff] }
  0x5b   :  { %v607_v32 = vld [vmem:[#allocation8 + $0x10] sm:$0xff]  ;;  %v608_v33 = vld [vmem:[#allocation8 + $0x18] sm:$0xff]  ;;  %v609_v36 = vld [vmem:[#allocation8 + $0x20] sm:$0xff] }
  0x5c   :  { %v610_v37 = vld [vmem:[#allocation8 + $0x28] sm:$0xff]  ;;  %v611_v39 = vld [vmem:[#allocation8 + $0x30] sm:$0xff]  ;;  %v612_v40 = vld [vmem:[#allocation8 + $0x38] sm:$0xff] }
  0x5d   :  { %1297 = vmatpush3.bf16.msra.mxu0 %v1296_v16  ;;  %v1720_v16 = vld [vmem:[%s1805_s1] sm:$0xff]  ;;  %v614_v42 = vld [vmem:[#allocation8 + $0x48] sm:$0xff]  ;;  %v619_v49 = vld [vmem:[#allocation8 + $0x70] sm:$0xff] }
  0x5e   :  { %1298 = vmatprep.subr.bf16.mxu0 %v1513_v0  ;;  %v617_v46 = vld [vmem:[#allocation8 + $0x60] sm:$0xff]  ;;  %v870_v62 = vld [vmem:[%s1817_s13 + $0x8] sm:$0xff]  ;;  %v872_v2 = vld [vmem:[%s1817_s13 + $0x18] sm:$0xff] }
  0x5f   :  { %v1005_v51 = vld [vmem:[%s1809_s5] ss:$0 sm:$0xff]  ;;  %v770_v8 = vld [vmem:[%s1816_s12 + $0x10] sm:$0xff]  ;;  %v771_v9 = vld [vmem:[%s1816_s12 + $0x18] sm:$0xff] }
  0x60   :  { %v1009_v55 = vld [vmem:[%s1813_s9] ss:$0 sm:$0xff] }
  0x61   :  { %1300 = vmatpush3.bf16.msra.mxu0 %v1299_v19  ;;  %v456_v19 = vld [vmem:[#allocation7 + $0x70] sm:$0xff]  ;;  %v768_v61 = vld [vmem:[%s1816_s12] sm:$0xff] }
  0x62   :  { %1301 = vmatprep.subr.bf16.mxu0 %v1513_v0  ;;  %v1353_v21 = vpack.c.bf16 %v457_v20, %v456_v19  ;;  %v1011_v3 = vld [vmem:[%s1815_s11] ss:$0 sm:$0xff]  ;;  %s1516_s11 = smov [#allocation10]  }
  0x65   :  { %1303 = vmatpush3.bf16.msra.mxu0 %v1302_v22  ;;  %v1007_v22 = vld [vmem:[%s1811_s7] ss:$0 sm:$0xff] }
  0x66   :  { %1304 = vmatprep.subr.bf16.mxu0 %v1513_v0 }
  0x69   :  { %1306 = vmatpush3.bf16.msra.mxu0 %v1305_v25 }
  0x6a   :  { %1182 = vmatprep.subr.mxu0 %v1515_v1 }
  0x6c   :  { %1140 = vmatmul.mubr.f32.vlgmr.msra.gmra.mrb[0].mxu0 %v104_v26 }
  0x6d   :  { %1184 = vmatprep.mubr.msk.f32.mxu0 %vm1514_vm0, %v1515_v1 }
 0x13f   :  { %v187_v31 = vpop.f32.mrb[0].mxu0 }
 0x140   :  { %v1141_v34 = vpop.f32.mrb[1].mxu0  ;;  %1143 = vmatpush3.msra.mxu1 %v187_v31 }
 0x141   :  { %1145 = vmatmul.mubr.msk.f32.vlgmr.msra.gmra.mrb[0].mxu1 %vm198_vm1, %v1688_v29  ;;  %1307 = vmatprep.subr.bf16.mxu1 %v1513_v0 }
 0x142   :  { %1309 = vmatpush3.bf16.msra.mxu1 %v1308_v30  ;;  %1179 = vmatprep.mubr.msk.f32.mxu1 %vm1514_vm0, %v1515_v1  ;;  %v1356_v30 = vpack.c.bf16 %v606_v28, %v605_v27 }
 0x143   :  { %1310 = vmatprep.subr.bf16.mxu1 %v1513_v0 }
 0x146   :  { %1312 = vmatpush3.bf16.msra.mxu1 %v1311_v35  ;;  %v1359_v35 = vpack.c.bf16 %v608_v33, %v607_v32 }
 0x147   :  { %1313 = vmatprep.subr.bf16.mxu1 %v1513_v0 }
 0x14a   :  { %1315 = vmatpush3.bf16.msra.mxu1 %v1314_v38  ;;  %v1362_v38 = vpack.c.bf16 %v610_v37, %v609_v36 }
 0x14b   :  { %1316 = vmatprep.subr.bf16.mxu1 %v1513_v0 }
 0x14e   :  { %1318 = vmatpush3.bf16.msra.mxu1 %v1317_v41  ;;  %v1365_v41 = vpack.c.bf16 %v612_v40, %v611_v39 }
 0x14f   :  { %1319 = vmatprep.subr.bf16.mxu1 %v1513_v0 }
 0x152   :  { %1321 = vmatpush3.bf16.msra.mxu1 %v1320_v44  ;;  %v616_v44 = vld [vmem:[#allocation8 + $0x58] sm:$0xff] }
 0x153   :  { %1322 = vmatprep.subr.bf16.mxu1 %v1513_v0 }
 0x156   :  { %1324 = vmatpush3.bf16.msra.mxu1 %v1323_v47  ;;  %v618_v47 = vld [vmem:[#allocation8 + $0x68] sm:$0xff] }
 0x157   :  { %1325 = vmatprep.subr.bf16.mxu1 %v1513_v0  ;;  %v1374_v48 = vpack.c.bf16 %v618_v47, %v617_v46 }
 0x15a   :  { %1327 = vmatpush3.bf16.msra.mxu1 %v1326_v50  ;;  %v620_v50 = vld [vmem:[#allocation8 + $0x78] sm:$0xff] }
 0x15b   :  { %1328 = vmatprep.subr.bf16.mxu1 %v1513_v0  ;;  %v1377_v52 = vpack.c.bf16 %v620_v50, %v619_v49 }
 0x15e   :  { %1330 = vmatpush3.bf16.msra.mxu1 %v1329_v53 }
 0x15f   :  { %1331 = vmatprep.subr.bf16.mxu1 %v1513_v0 }
 0x161   :  { %1180 = vmatmul.mubr.f32.vlgmr.msra.gmra.mrb[2].mxu1 %v273_v54 }
 0x162   :  { %1219 = vmatprep.mubr.msk.f32.mxu1 %vm1514_vm0, %v1515_v1  ;;  %1333 = vmatpush3.bf16.msra.mxu1 %v1332_v58 }
 0x163   :  { %1334 = vmatprep.subr.bf16.mxu1 %v1513_v0 }
 0x166   :  { %1336 = vmatpush3.bf16.msra.mxu1 %v1335_v60 }
 0x167   :  { %1337 = vmatprep.subr.bf16.mxu1 %v1513_v0 }
 0x16a   :  { %1339 = vmatpush3.bf16.msra.mxu1 %v1338_v63  ;;  %v871_v63 = vld [vmem:[%s1817_s13 + $0x10] sm:$0xff] }
 0x16b   :  { %1340 = vmatprep.subr.bf16.mxu1 %v1513_v0 }
 0x16e   :  { %1342 = vmatpush3.bf16.msra.mxu1 %v1341_v4 }
 0x16f   :  { %1343 = vmatprep.subr.bf16.mxu1 %v1513_v0 }
 0x172   :  { %1345 = vmatpush3.bf16.msra.mxu1 %v1344_v7  ;;  %v769_v7 = vld [vmem:[%s1816_s12 + $0x8] sm:$0xff]  ;;  %s991_s12 = sshll.u32 %s1516_s11, 4  ;;  %s992_s12 = int_to_ptr.vmem [resolvable:$true] %s991_s12 }
 0x173   :  { %1346 = vmatprep.subr.bf16.mxu1 %v1513_v0  ;;  %s1477_s3 = scalar_lea.vmem %s992_s12, 512  ;;  %p1482_p5 = scmp.lt.s32.totalorder %s992_s12, %s992_s12 }
 0x174   :  { %p1478_p4 = scmp.ne.s32.totalorder %s992_s12, %s1477_s3  ;;  %p1483_p6 = scmp.lt.s32.totalorder %s1477_s3, %s1477_s3 }
 0x176   :  { %1348 = vmatpush3.bf16.msra.mxu1 %v1347_v10  ;;  %p1484_p7 = por %p1483_p6, %p1482_p5 }
 0x177   :  { %1349 = vmatprep.subr.bf16.mxu1 %v1513_v0 }
 0x178   :  { %p1485_p8 = pnand %p1484_p7, %p1478_p4 }
 0x17a   :  { %1351 = vmatpush3.bf16.msra.mxu1 %v1350_v13 }
 0x17b   :  { %1352 = vmatprep.subr.bf16.mxu1 %v1513_v0 }
 0x17e   :  { %1354 = vmatpush3.bf16.msra.mxu1 %v1353_v21 }
 0x17f   :  { %1262 = vmatprep.subr.mxu1 %v1515_v1 }
 0x214   :  { %v1715_v14 = vpop.f32.mrb[0].mxu1 }
 0x215   :  { %v1146_v15 = vpop.f32.mrb[1].mxu1  ;;  %v269_v53 = vadd.f32 %v1005_v51, %v1715_v14 }
 0x217   :  { %v440_v54 = vmax.f32 %v269_v53, 0.0 }
 0x234   :  { %v356_v17 = vpop.f32.mrb[2].mxu1 }
 0x235   :  { %v1181_v18 = vpop.f32.mrb[3].mxu1  ;;  %1183 = vmatpush3.msra.mxu0 %v356_v17 }
 0x236   :  { %1185 = vmatmul.mubr.msk.f32.vlgmr.msra.gmra.mrb[2].mxu0 %vm198_vm1, %v1720_v16  ;;  %1222 = vmatprep.subr.mxu0 %v1515_v1 }
 0x237   :  { %1224 = vmatprep.mubr.msk.f32.mxu0 %vm1514_vm0, %v1515_v1 }
 0x309   :  { %v436_v23 = vpop.f32.mrb[2].mxu0 }
 0x30a   :  { %v437_v24 = vadd.f32 %v1007_v22, %v436_v23  ;;  %v1186_v25 = vpop.f32.mrb[3].mxu0 }
 0x30c   :  { %v441_v26 = vmax.f32 %v437_v24, 0.0 }
 0x30e   :  { %1220 = vmatmul.mubr.f32.vlgmr.msra.gmra.mrb[4].mxu1 %v441_v26 }
 0x30f   :  { %1264 = vmatprep.mubr.msk.f32.mxu1 %vm1514_vm0, %v1515_v1 }
 0x3e1   :  { %v524_v31 = vpop.f32.mrb[4].mxu1 }
 0x3e2   :  { %v1221_v34 = vpop.f32.mrb[5].mxu1  ;;  %1223 = vmatpush3.msra.mxu0 %v524_v31 }
 0x3e3   :  { %1225 = vmatmul.mubr.msk.f32.vlgmr.msra.gmra.mrb[4].mxu0 %vm198_vm1, %v1688_v29  ;;  %1355 = vmatprep.subr.bf16.mxu0 %v1513_v0  ;;  %v613_v29 = vld [vmem:[#allocation8 + $0x40] sm:$0xff] }
 0x3e4   :  { %1357 = vmatpush3.bf16.msra.mxu0 %v1356_v30  ;;  %1259 = vmatprep.mubr.msk.f32.mxu0 %vm1514_vm0, %v1515_v1  ;;  %v1368_v43 = vpack.c.bf16 %v614_v42, %v613_v29  ;;  %v615_v1 = vld [vmem:[#allocation8 + $0x50] sm:$0xff] }
 0x3e5   :  { %1358 = vmatprep.subr.bf16.mxu0 %v1513_v0  ;;  %v1371_v45 = vpack.c.bf16 %v616_v44, %v615_v1 }
 0x3e8   :  { %1360 = vmatpush3.bf16.msra.mxu0 %v1359_v35 }
 0x3e9   :  { %1361 = vmatprep.subr.bf16.mxu0 %v1513_v0 }
 0x3ec   :  { %1363 = vmatpush3.bf16.msra.mxu0 %v1362_v38 }
 0x3ed   :  { %1364 = vmatprep.subr.bf16.mxu0 %v1513_v0 }
 0x3f0   :  { %1366 = vmatpush3.bf16.msra.mxu0 %v1365_v41 }
 0x3f1   :  { %1367 = vmatprep.subr.bf16.mxu0 %v1513_v0 }
 0x3f4   :  { %1369 = vmatpush3.bf16.msra.mxu0 %v1368_v43 }
 0x3f5   :  { %1370 = vmatprep.subr.bf16.mxu0 %v1513_v0 }
 0x3f8   :  { %1372 = vmatpush3.bf16.msra.mxu0 %v1371_v45 }
 0x3f9   :  { %1373 = vmatprep.subr.bf16.mxu0 %v1513_v0 }
 0x3fc   :  { %1375 = vmatpush3.bf16.msra.mxu0 %v1374_v48 }
 0x3fd   :  { %1376 = vmatprep.subr.bf16.mxu0 %v1513_v0  ;;  %v869_v0 = vld [vmem:[%s1817_s13] sm:$0xff] }
 0x400   :  { %1378 = vmatpush3.bf16.msra.mxu0 %v1377_v52 }
 0x403   :  { %1260 = vmatmul.mubr.f32.vlgmr.msra.gmra.mrb[6].mxu0 %v440_v54 }
 0x404   :  { %1277 = vmatprep.mubr.msk.f32.mxu0 %vm198_vm1, %v869_v0 }
 0x4b6   :  { %v601_v56 = vpop.f32.mrb[4].mxu0 }
 0x4b7   :  { %v602_v57 = vadd.f32 %v1009_v55, %v601_v56  ;;  %v1226_v58 = vpop.f32.mrb[5].mxu0 }
 0x4b9   :  { %1275 = vmatprep.subr.mxu0 %v602_v57 }
 0x4ba   :  { %1276 = vmatpush3.msra.mxu0 %v602_v57 }
 0x4bb   :  { %1278 = vmatmul.mubr.msk.f32.vlgmr.msra.gmra.mrb[8].mxu0 %vm198_vm1, %v870_v62 }
 0x4bc   :  { %1280 = vmatprep.mubr.msk.f32.mxu0 %vm198_vm1, %v871_v63 }
 0x4bf   :  { %1281 = vmatmul.mubr.msk.f32.gmra.mrb[10].mxu0 %vm198_vm1, %v872_v2 }
 0x4d6   :  { %v687_v59 = vpop.f32.mrb[6].mxu0 }
 0x4d7   :  { %v1261_v60 = vpop.f32.mrb[7].mxu0  ;;  %1263 = vmatpush3.msra.mxu1 %v687_v59 }
 0x4d8   :  { %1265 = vmatmul.mubr.msk.f32.vlgmr.msra.gmra.mrb[6].mxu1 %vm198_vm1, %v1720_v16 }
 0x4d9   :  { %1269 = vmatprep.mubr.msk.f32.mxu1 %vm198_vm1, %v768_v61 }
 0x58e   :  { %v1279_v10 = vpop.f32.mrb[8].mxu0 }
 0x58f   :  { %v951_v11 = vpop.f32.mrb[9].mxu0 }
 0x592   :  { %v1282_v12 = vpop.f32.mrb[10].mxu0 }
 0x593   :  { %v961_v13 = vpop.f32.mrb[11].mxu0 }
 0x5ab   :  { %v764_v4 = vpop.f32.mrb[6].mxu1 }
 0x5ac   :  { %v765_v5 = vadd.f32 %v1011_v3, %v764_v4  ;;  %v1266_v6 = vpop.f32.mrb[7].mxu1 }
 0x5ae   :  { %1267 = vmatprep.subr.mxu1 %v765_v5 }
 0x5af   :  { %1268 = vmatpush3.msra.mxu1 %v765_v5 }
 0x5b0   :  { %1270 = vmatmul.mubr.msk.f32.vlgmr.msra.gmra.mrb[8].mxu1 %vm198_vm1, %v769_v7 }
 0x5b1   :  { %1272 = vmatprep.mubr.msk.f32.mxu1 %vm198_vm1, %v770_v8 }
 0x5b4   :  { %1273 = vmatmul.mubr.msk.f32.gmra.mrb[10].mxu1 %vm198_vm1, %v771_v9 }
 0x683   :  { %v1271_v14 = vpop.f32.mrb[8].mxu1 }
 0x684   :  { %v971_v15 = vmul.f32 %v1279_v10, %v1271_v14  ;;  %v850_v16 = vpop.f32.mrb[9].mxu1 }
 0x685   :  { %v970_v17 = vmul.f32 %v951_v11, %v850_v16 }
 0x687   :  { %974 = vadd.xlane.f32.xlu0 %v970_v17  ;;  %v1274_v18 = vpop.f32.mrb[10].mxu1 }
 0x688   :  { %v973_v19 = vmul.f32 %v1282_v12, %v1274_v18  ;;  %v860_v20 = vpop.f32.mrb[11].mxu1 }
 0x689   :  { %v972_v21 = vmul.f32 %v961_v13, %v860_v20 }
 0x68b   :  { %976 = vadd.xlane.f32.xlu0 %v971_v15  ;;  %978 = vadd.xlane.f32.xlu1 %v972_v21 }
 0x68f   :  { %980 = vadd.xlane.f32.xlu1 %v973_v19 }
 0x714   :  { %v975_v22 = vpop.xlane.xlu0 %974 }
 0x715   :  { %982 = vst [vmem:[#allocation10] sm:$0xff] %v975_v22 }
 0x718   :  { %v977_v23 = vpop.xlane.xlu0 %976  ;;  %v979_v24 = vpop.xlane.xlu1 %978 }
 0x719   :  { %983 = vst [vmem:[#allocation10 + $0x8] sm:$0xff] %v977_v23  ;;  %984 = vst [vmem:[#allocation10 + $0x10] sm:$0xff] %v979_v24 }
 0x71c   :  { %v981_v25 = vpop.xlane.xlu1 %980 }
 0x71d   :  { %985 = vst [vmem:[#allocation10 + $0x18] sm:$0xff] %v981_v25 }
 0x71e   :  { %1488 = shalt.err (!%p1485_p8)
}
 0x71f   :  { %s1489_s1 = scalar_lea.hbm %s1818_s14, 512 }
 0x720   :  { %p1490_p9 = scmp.ne.s32.totalorder %s1818_s14, %s1489_s1  ;;  %p1493_p10 = scmp.lt.u32.totalorder %s1489_s1, %s1818_s14 }
 0x722   :  { %p1495_p11 = pnand %p1493_p10, %p1490_p9 }
 0x724   :  { %1498 = shalt.err (!%p1495_p11)
}
 0x725   :  { %997 = dma.vmem_to_hbm [thread:$0]  %s992_s12, 512, %s1818_s14, [#allocation4], %s1509_s25, %s1509_s25, %s1510_s26  }
 0x726   :  { %1505 = dma.done.wait [#allocation4], 512  }
 0x727   :  { %1506 = vsyncadd [#allocation4], 4294966784 }
 0x728   :  { %1001 = vsyncpa [#allocation3], 1 }
 0x729   :  { %1002 = vsyncpa [#allocation6], 1 }
 0x72a   :  { %1003 = vsyncpa [#allocation9], 1 }
 0x72b   :  { %1004 = vsyncpa [#allocation4], 1 }

</bundles_post_ra>
